<compile_context>
chip_gen: v7x
topology: tpu7x:2x2x1
jax: 0.10.0
libtpu: 0.0.40
codegen_flags: <defaults>
</compile_context>

<pallas_src>
import functools

import numpy as np
import jax
import jax.numpy as jnp
from jax import lax
from jax.experimental import pallas as pl
from jax.experimental.pallas import tpu as pltpu


# PoolingType enum values (match the PyTorch IntEnum)
LAST, ALL, CLS, MEAN = 0, 1, 2, 3

_EPS = 1e-12                      # torch.nn.functional.normalize default eps
_VMEM_BUDGET = 40 * 1024 * 1024   # buffering budget; conservative for v7x (64 MiB VMEM)
_VMEM_HEADROOM = 8 * 1024 * 1024
_MAX_TK = 1024                    # 512-1024 row tiles reach ~85% of the HBM roofline


def _vmem_limit(footprint_bytes):
    # Raise the scoped-VMEM limit above the per-generation defaults (16/32 MiB)
    # so the chosen tiles actually compile; cap well under physical VMEM.
    return int(min(max(footprint_bytes + _VMEM_HEADROOM, 32 << 20), 100 << 20))


def _round_tile(tk, total):
    """Clamp a row-tile size to [8, total], sublane-aligned (multiple of 8)."""
    if total <= 8:
        return int(total)
    tk = max(8, min(int(tk), int(total), _MAX_TK))
    return max(8, (tk // 8) * 8)


def _l2_normalize(x_f32):
    # x / max(||x||, eps)  ==  x * rsqrt(max(sum_sq, eps^2))   (EUP, no divide)
    ss = jnp.sum(x_f32 * x_f32, axis=1, keepdims=True)
    return x_f32 * lax.rsqrt(jnp.maximum(ss, _EPS * _EPS))


# --------------------------- CLS / LAST: batched row gather ---------------------------
def _gather_kernel(rows_ref, hs_ref, out_ref, buf_ref, sem_ref, *, group, normalize):
    i = pl.program_id(0)
    # Issue all `group` row DMAs (kept in flight together), then wait.  The batched
    # (G, H) block amortizes per-step overhead and keeps output stores unmasked.
    for j in range(group):
        row = rows_ref[i * group + j]
        pltpu.make_async_copy(hs_ref.at[row], buf_ref.at[j], sem_ref.at[j]).start()
    for j in range(group):
        pltpu.make_async_copy(hs_ref.at[0], buf_ref.at[j], sem_ref.at[j]).wait()
    x = buf_ref[...]                                   # (G, H)
    if normalize:
        x = _l2_normalize(x.astype(jnp.float32))
    out_ref[...] = x.astype(out_ref.dtype)


def _gather_rows(hidden_states, rows, normalize):
    T, H = hidden_states.shape
    N = int(rows.shape[0])
    hs_bytes = hidden_states.dtype.itemsize
    group = 32 if N > 32 else 8
    n_pad = pl.cdiv(N, group) * group
    if n_pad != N:
        # Pad with row 0 (always a valid HBM row); padded outputs are discarded.
        rows = jnp.concatenate([rows, jnp.zeros((n_pad - N,), jnp.int32)])

    out = pl.pallas_call(
        functools.partial(_gather_kernel, group=group, normalize=normalize),
        out_shape=jax.ShapeDtypeStruct((n_pad, H), hidden_states.dtype),
        grid_spec=pltpu.PrefetchScalarGridSpec(
            num_scalar_prefetch=1,            # rows -> SMEM, read inside the kernel
            grid=(n_pad // group,),
            in_specs=[pl.BlockSpec(memory_space=pl.ANY)],   # hidden_states stays in HBM
            out_specs=pl.BlockSpec((group, H), lambda i, rows_ref: (i, 0)),
            scratch_shapes=[pltpu.VMEM((group, H), hidden_states.dtype),
                            pltpu.SemaphoreType.DMA((group,))],
        ),
        compiler_params=pltpu.CompilerParams(dimension_semantics=("parallel",)),
        cost_estimate=pl.CostEstimate(
            flops=(3 * n_pad * H) if normalize else 0,
            transcendentals=n_pad if normalize else 0,
            bytes_accessed=2 * n_pad * H * hs_bytes),
    )(rows, hidden_states)
    return out[:N] if n_pad != N else out


# ------------------------------ MEAN: segment-sum ------------------------------
def _mean_kernel(starts_ref, ends_ref, inv_ref, hs_ref, out_ref, acc_ref,
                 *, total_tokens, tk):
    t = pl.program_id(1)

    @pl.when(t == 0)
    def _():
        acc_ref[...] = jnp.zeros_like(acc_ref)

    starts = starts_ref[...]                                        # (N, 1) int32
    ends = ends_ref[...]                                            # (N, 1) int32
    tok = t * tk + lax.broadcasted_iota(jnp.int32, (1, tk), 1)      # (1, TK)
    mask = (tok >= starts) & (tok < ends)                           # (N, TK) bool

    hs = hs_ref[...]                                                # (TK, TH)
    if total_tokens % tk != 0:
        # Zero padded tail rows so stale VMEM never enters the accumulation
        # (load-bearing: 0 * NaN would poison the MXU accumulator).
        row_tok = t * tk + lax.broadcasted_iota(jnp.int32, (tk, 1), 0)
        hs = jnp.where(row_tok < total_tokens, hs, 0)

    acc_ref[...] += jnp.dot(mask.astype(hs.dtype), hs,
                            preferred_element_type=jnp.float32)

    @pl.when(t == pl.num_programs(1) - 1)
    def _():
        # NOTE: zero-length sequences produce inf/NaN (same as the torch module);
        # caller precondition is prompt_lens > 0.
        out_ref[...] = (acc_ref[...] * inv_ref[...]).astype(out_ref.dtype)


def _mean_pool(hidden_states, starts, ends, inv_lens):
    T, H = hidden_states.shape
    N = int(starts.shape[0])
    hs_bytes = hidden_states.dtype.itemsize
    out_bytes = hs_bytes

    # H-parallel leading axis: keeps both v7x TensorCores streaming disjoint
    # column slices (total HBM traffic unchanged); neutral on v5e/v6e.
    th = H // 2 if (H % 256 == 0 and H >= 1024) else H

    # Token tile sized from the VMEM budget: double-buffered hs chunk + f32
    # accumulator + double-buffered output block.
    fixed = N * th * 4 + 2 * N * th * out_bytes + 6 * 4 * N
    avail = max(_VMEM_BUDGET - fixed, 1 << 20)
    tk = _round_tile(avail // (2 * th * hs_bytes), T)
    footprint = 2 * tk * th * hs_bytes + fixed

    return pl.pallas_call(
        functools.partial(_mean_kernel, total_tokens=T, tk=tk),
        out_shape=jax.ShapeDtypeStruct((N, H), hidden_states.dtype),
        grid_spec=pltpu.PrefetchScalarGridSpec(
            num_scalar_prefetch=0,
            grid=(H // th, pl.cdiv(T, tk)),
            in_specs=[
                pl.BlockSpec((N, 1), lambda h, t: (0, 0)),     # starts
                pl.BlockSpec((N, 1), lambda h, t: (0, 0)),     # ends
                pl.BlockSpec((N, 1), lambda h, t: (0, 0)),     # 1/len (f32)
                pl.BlockSpec((tk, th), lambda h, t: (t, h)),   # token chunk
            ],
            out_specs=pl.BlockSpec((N, th), lambda h, t: (0, h)),
            scratch_shapes=[pltpu.VMEM((N, th), jnp.float32)],
        ),
        compiler_params=pltpu.CompilerParams(
            dimension_semantics=("parallel", "arbitrary"),
            vmem_limit_bytes=_vmem_limit(footprint)),
        cost_estimate=pl.CostEstimate(
            flops=2 * N * T * H,
            transcendentals=0,
            bytes_accessed=T * H * hs_bytes + N * H * out_bytes + 3 * N * 4),
    )(starts.reshape(N, 1), ends.reshape(N, 1), inv_lens.reshape(N, 1), hidden_states)


# ------------------------ per-row L2 normalize (ALL / MEAN epilogue) ------------------------
def _row_norm_kernel(x_ref, out_ref):
    out_ref[...] = _l2_normalize(x_ref[...].astype(jnp.float32)).astype(out_ref.dtype)


def _normalize_rows(x):
    R, H = x.shape
    b = x.dtype.itemsize
    # Input + output are both double-buffered -> 4 * TK * H * bytes must fit the budget.
    tk = _round_tile(_VMEM_BUDGET // (4 * H * b), R)
    footprint = 4 * tk * H * b
    return pl.pallas_call(
        _row_norm_kernel,
        out_shape=jax.ShapeDtypeStruct((R, H), x.dtype),
        grid_spec=pltpu.PrefetchScalarGridSpec(
            num_scalar_prefetch=0,
            grid=(pl.cdiv(R, tk),),
            in_specs=[pl.BlockSpec((tk, H), lambda t: (t, 0))],
            out_specs=pl.BlockSpec((tk, H), lambda t: (t, 0)),
        ),
        compiler_params=pltpu.CompilerParams(
            dimension_semantics=("parallel",),
            vmem_limit_bytes=_vmem_limit(footprint)),
        cost_estimate=pl.CostEstimate(
            flops=3 * R * H, transcendentals=R, bytes_accessed=2 * R * H * b),
    )(x)


# ----------------------------------- wrapper -----------------------------------
def pooler(hidden_states, prompt_lens, pooling_type, normalize):
    """JAX/Pallas equivalent of Pooler.forward.

    Returns [num_seqs, hidden] for CLS/LAST/MEAN, or a Python list of
    [len_i, hidden] arrays for ALL (ragged, like the PyTorch module).
    `prompt_lens` may be a host numpy array (preferred) or a device array.
    """
    T, H = hidden_states.shape
    N = int(prompt_lens.shape[0])

    if pooling_type == ALL:
        # normalize=False is an identity: no kernel, no extra HBM traffic.
        dense = _normalize_rows(hidden_states) if normalize else hidden_states
        if isinstance(prompt_lens, np.ndarray):
            lens_host = prompt_lens
        else:
            # TODO(synk): pass prompt_lens as host numpy to avoid this blocking sync.
            lens_host = np.asarray(jax.device_get(prompt_lens))
        offs = np.concatenate([[0], np.cumsum(lens_host)]).astype(np.int64)
        # NOTE: prefer consuming (dense, offs) directly; each slice below is a
        # separate small XLA slice op, kept only for module-semantics parity.
        return [dense[int(offs[i]):int(offs[i + 1])] for i in range(N)]

    lens_dev = jnp.asarray(prompt_lens, dtype=jnp.int32)
    ends = jnp.cumsum(lens_dev).astype(jnp.int32)
    starts = (ends - lens_dev).astype(jnp.int32)

    if pooling_type in (CLS, LAST):
        rows = starts if pooling_type == CLS else (ends - 1).astype(jnp.int32)
        return _gather_rows(hidden_states, rows, normalize)

    if pooling_type == MEAN:
        inv_lens = 1.0 / lens_dev.astype(jnp.float32)   # precomputed per-row reciprocal
        pooled = _mean_pool(hidden_states, starts, ends, inv_lens)
        if normalize:
            pooled = _normalize_rows(pooled)
        return pooled

    raise ValueError(f"Invalid pooling type: {pooling_type}")


# ---------------- reference (pure numpy, mirrors the PyTorch forward) ----------------
def _ref_pool(hs, lens, pooling_type, normalize):
    hs = np.asarray(hs, dtype=np.float32)
    lens = np.asarray(lens)
    offsets = np.concatenate([[0], np.cumsum(lens)])
    if pooling_type == CLS:
        pooled = hs[offsets[:-1]]
    elif pooling_type == LAST:
        pooled = hs[offsets[1:] - 1]
    elif pooling_type == MEAN:
        pooled = np.stack(
            [hs[offsets[i]:offsets[i + 1]].mean(axis=0) for i in range(len(lens))]
        )
    elif pooling_type == ALL:
        pooled = hs.copy()
    else:
        raise ValueError(pooling_type)
    if normalize:
        norm = np.maximum(np.linalg.norm(pooled, axis=1, keepdims=True), _EPS)
        pooled = pooled / norm
    return pooled


if __name__ == "__main__":
    key = jax.random.PRNGKey(0)
    hidden = 32
    prompt_lens = np.array([3, 5, 8], dtype=np.int32)   # total tokens = 16
    total_tokens = int(prompt_lens.sum())

    hidden_states = jax.random.normal(key, (total_tokens, hidden), dtype=jnp.float32)

    ok = True
    for ptype in (LAST, CLS, MEAN):
        for normalize in (False, True):
            out = jax.block_until_ready(pooler(hidden_states, prompt_lens, ptype, normalize))
            ref = _ref_pool(hidden_states, prompt_lens, ptype, normalize)
            ok &= np.allclose(np.asarray(out), ref, atol=1e-5, rtol=1e-5)

    # ALL pooling (ragged output, optionally normalized per token)
    for normalize in (False, True):
        outs = pooler(hidden_states, prompt_lens, ALL, normalize)
        outs = [jax.block_until_ready(o) for o in outs]
        ref_all = _ref_pool(hidden_states, prompt_lens, ALL, normalize)
        cat = np.concatenate([np.asarray(o) for o in outs], axis=0)
        ok &= np.allclose(cat, ref_all, atol=1e-5, rtol=1e-5)

    print("KERNEL_OK" if ok else "KERNEL_MISMATCH")
</pallas_src>

<mosaic_0001>
module attributes {stable_mosaic.version = 11 : i64} {
  func.func @_gather_kernel(%arg0: i32, %arg1: memref<8xi32, #tpu.memory_space<smem>>, %arg2: memref<16x32xf32, #tpu.memory_space<any>>, %arg3: memref<8x32xf32, #tpu.memory_space<vmem>>, %arg4: memref<8x32xf32, #tpu.memory_space<vmem>>, %arg5: memref<8x!tpu.dma_semaphore, #tpu.memory_space<semaphore_mem>>) attributes {dimension_semantics = [#tpu.dimension_semantics<parallel>], iteration_bounds = array<i64: 1>, scalar_prefetch = 1 : i64, scratch_operands = 2 : i64, tpu.core_type = #tpu.core_type<tc>, window_params = [{}, {transform_indices = @transform_1, window_bounds = array<i64: 8, 32>}]} {
    %c8_i32 = arith.constant 8 : i32
    %0 = arith.muli %arg0, %c8_i32 : i32
    %c0_i32 = arith.constant 0 : i32
    %1 = arith.addi %0, %c0_i32 : i32
    %2 = arith.index_cast %1 : i32 to index
    %3 = memref.load %arg1[%2] : memref<8xi32, #tpu.memory_space<smem>>
    %c0_i32_0 = arith.constant 0 : i32
    %c0_i32_1 = arith.constant 0 : i32
    %c0_i32_2 = arith.constant 0 : i32
    %4 = tpu.memref_slice %arg2[%3, %c0_i32_2] : memref<16x32xf32, #tpu.memory_space<any>> -> memref<1x32xf32, #tpu.memory_space<any>>
    %5 = tpu.memref_squeeze %4 : memref<1x32xf32, #tpu.memory_space<any>> -> memref<32xf32, #tpu.memory_space<any>>
    %c0_i32_3 = arith.constant 0 : i32
    %6 = tpu.memref_slice %arg4[%c0_i32_0, %c0_i32_3] : memref<8x32xf32, #tpu.memory_space<vmem>> -> memref<1x32xf32, #tpu.memory_space<vmem>>
    %7 = tpu.memref_squeeze %6 : memref<1x32xf32, #tpu.memory_space<vmem>> -> memref<32xf32, #tpu.memory_space<vmem>>
    %8 = tpu.memref_slice %arg5[%c0_i32_1] : memref<8x!tpu.dma_semaphore, #tpu.memory_space<semaphore_mem>> -> memref<1x!tpu.dma_semaphore, #tpu.memory_space<semaphore_mem>>
    %9 = tpu.memref_squeeze %8 : memref<1x!tpu.dma_semaphore, #tpu.memory_space<semaphore_mem>> -> memref<!tpu.dma_semaphore, #tpu.memory_space<semaphore_mem>>
    tpu.enqueue_dma source(%5 : memref<32xf32, #tpu.memory_space<any>>) target(%7 : memref<32xf32, #tpu.memory_space<vmem>>) target_semaphore(%9 : memref<!tpu.dma_semaphore, #tpu.memory_space<semaphore_mem>>)
    %c8_i32_4 = arith.constant 8 : i32
    %10 = arith.muli %arg0, %c8_i32_4 : i32
    %c1_i32 = arith.constant 1 : i32
    %11 = arith.addi %10, %c1_i32 : i32
    %12 = arith.index_cast %11 : i32 to index
    %13 = memref.load %arg1[%12] : memref<8xi32, #tpu.memory_space<smem>>
    %c1_i32_5 = arith.constant 1 : i32
    %c1_i32_6 = arith.constant 1 : i32
    %c0_i32_7 = arith.constant 0 : i32
    %14 = tpu.memref_slice %arg2[%13, %c0_i32_7] : memref<16x32xf32, #tpu.memory_space<any>> -> memref<1x32xf32, #tpu.memory_space<any>>
    %15 = tpu.memref_squeeze %14 : memref<1x32xf32, #tpu.memory_space<any>> -> memref<32xf32, #tpu.memory_space<any>>
    %c0_i32_8 = arith.constant 0 : i32
    %16 = tpu.memref_slice %arg4[%c1_i32_5, %c0_i32_8] : memref<8x32xf32, #tpu.memory_space<vmem>> -> memref<1x32xf32, #tpu.memory_space<vmem>>
    %17 = tpu.memref_squeeze %16 : memref<1x32xf32, #tpu.memory_space<vmem>> -> memref<32xf32, #tpu.memory_space<vmem>>
    %18 = tpu.memref_slice %arg5[%c1_i32_6] : memref<8x!tpu.dma_semaphore, #tpu.memory_space<semaphore_mem>> -> memref<1x!tpu.dma_semaphore, #tpu.memory_space<semaphore_mem>>
    %19 = tpu.memref_squeeze %18 : memref<1x!tpu.dma_semaphore, #tpu.memory_space<semaphore_mem>> -> memref<!tpu.dma_semaphore, #tpu.memory_space<semaphore_mem>>
    tpu.enqueue_dma source(%15 : memref<32xf32, #tpu.memory_space<any>>) target(%17 : memref<32xf32, #tpu.memory_space<vmem>>) target_semaphore(%19 : memref<!tpu.dma_semaphore, #tpu.memory_space<semaphore_mem>>)
    %c8_i32_9 = arith.constant 8 : i32
    %20 = arith.muli %arg0, %c8_i32_9 : i32
    %c2_i32 = arith.constant 2 : i32
    %21 = arith.addi %20, %c2_i32 : i32
    %22 = arith.index_cast %21 : i32 to index
    %23 = memref.load %arg1[%22] : memref<8xi32, #tpu.memory_space<smem>>
    %c2_i32_10 = arith.constant 2 : i32
    %c2_i32_11 = arith.constant 2 : i32
    %c0_i32_12 = arith.constant 0 : i32
    %24 = tpu.memref_slice %arg2[%23, %c0_i32_12] : memref<16x32xf32, #tpu.memory_space<any>> -> memref<1x32xf32, #tpu.memory_space<any>>
    %25 = tpu.memref_squeeze %24 : memref<1x32xf32, #tpu.memory_space<any>> -> memref<32xf32, #tpu.memory_space<any>>
    %c0_i32_13 = arith.constant 0 : i32
    %26 = tpu.memref_slice %arg4[%c2_i32_10, %c0_i32_13] : memref<8x32xf32, #tpu.memory_space<vmem>> -> memref<1x32xf32, #tpu.memory_space<vmem>>
    %27 = tpu.memref_squeeze %26 : memref<1x32xf32, #tpu.memory_space<vmem>> -> memref<32xf32, #tpu.memory_space<vmem>>
    %28 = tpu.memref_slice %arg5[%c2_i32_11] : memref<8x!tpu.dma_semaphore, #tpu.memory_space<semaphore_mem>> -> memref<1x!tpu.dma_semaphore, #tpu.memory_space<semaphore_mem>>
    %29 = tpu.memref_squeeze %28 : memref<1x!tpu.dma_semaphore, #tpu.memory_space<semaphore_mem>> -> memref<!tpu.dma_semaphore, #tpu.memory_space<semaphore_mem>>
    tpu.enqueue_dma source(%25 : memref<32xf32, #tpu.memory_space<any>>) target(%27 : memref<32xf32, #tpu.memory_space<vmem>>) target_semaphore(%29 : memref<!tpu.dma_semaphore, #tpu.memory_space<semaphore_mem>>)
    %c8_i32_14 = arith.constant 8 : i32
    %30 = arith.muli %arg0, %c8_i32_14 : i32
    %c3_i32 = arith.constant 3 : i32
    %31 = arith.addi %30, %c3_i32 : i32
    %32 = arith.index_cast %31 : i32 to index
    %33 = memref.load %arg1[%32] : memref<8xi32, #tpu.memory_space<smem>>
    %c3_i32_15 = arith.constant 3 : i32
    %c3_i32_16 = arith.constant 3 : i32
    %c0_i32_17 = arith.constant 0 : i32
    %34 = tpu.memref_slice %arg2[%33, %c0_i32_17] : memref<16x32xf32, #tpu.memory_space<any>> -> memref<1x32xf32, #tpu.memory_space<any>>
    %35 = tpu.memref_squeeze %34 : memref<1x32xf32, #tpu.memory_space<any>> -> memref<32xf32, #tpu.memory_space<any>>
    %c0_i32_18 = arith.constant 0 : i32
    %36 = tpu.memref_slice %arg4[%c3_i32_15, %c0_i32_18] : memref<8x32xf32, #tpu.memory_space<vmem>> -> memref<1x32xf32, #tpu.memory_space<vmem>>
    %37 = tpu.memref_squeeze %36 : memref<1x32xf32, #tpu.memory_space<vmem>> -> memref<32xf32, #tpu.memory_space<vmem>>
    %38 = tpu.memref_slice %arg5[%c3_i32_16] : memref<8x!tpu.dma_semaphore, #tpu.memory_space<semaphore_mem>> -> memref<1x!tpu.dma_semaphore, #tpu.memory_space<semaphore_mem>>
    %39 = tpu.memref_squeeze %38 : memref<1x!tpu.dma_semaphore, #tpu.memory_space<semaphore_mem>> -> memref<!tpu.dma_semaphore, #tpu.memory_space<semaphore_mem>>
    tpu.enqueue_dma source(%35 : memref<32xf32, #tpu.memory_space<any>>) target(%37 : memref<32xf32, #tpu.memory_space<vmem>>) target_semaphore(%39 : memref<!tpu.dma_semaphore, #tpu.memory_space<semaphore_mem>>)
    %c8_i32_19 = arith.constant 8 : i32
    %40 = arith.muli %arg0, %c8_i32_19 : i32
    %c4_i32 = arith.constant 4 : i32
    %41 = arith.addi %40, %c4_i32 : i32
    %42 = arith.index_cast %41 : i32 to index
    %43 = memref.load %arg1[%42] : memref<8xi32, #tpu.memory_space<smem>>
    %c4_i32_20 = arith.constant 4 : i32
    %c4_i32_21 = arith.constant 4 : i32
    %c0_i32_22 = arith.constant 0 : i32
    %44 = tpu.memref_slice %arg2[%43, %c0_i32_22] : memref<16x32xf32, #tpu.memory_space<any>> -> memref<1x32xf32, #tpu.memory_space<any>>
    %45 = tpu.memref_squeeze %44 : memref<1x32xf32, #tpu.memory_space<any>> -> memref<32xf32, #tpu.memory_space<any>>
    %c0_i32_23 = arith.constant 0 : i32
    %46 = tpu.memref_slice %arg4[%c4_i32_20, %c0_i32_23] : memref<8x32xf32, #tpu.memory_space<vmem>> -> memref<1x32xf32, #tpu.memory_space<vmem>>
    %47 = tpu.memref_squeeze %46 : memref<1x32xf32, #tpu.memory_space<vmem>> -> memref<32xf32, #tpu.memory_space<vmem>>
    %48 = tpu.memref_slice %arg5[%c4_i32_21] : memref<8x!tpu.dma_semaphore, #tpu.memory_space<semaphore_mem>> -> memref<1x!tpu.dma_semaphore, #tpu.memory_space<semaphore_mem>>
    %49 = tpu.memref_squeeze %48 : memref<1x!tpu.dma_semaphore, #tpu.memory_space<semaphore_mem>> -> memref<!tpu.dma_semaphore, #tpu.memory_space<semaphore_mem>>
    tpu.enqueue_dma source(%45 : memref<32xf32, #tpu.memory_space<any>>) target(%47 : memref<32xf32, #tpu.memory_space<vmem>>) target_semaphore(%49 : memref<!tpu.dma_semaphore, #tpu.memory_space<semaphore_mem>>)
    %c8_i32_24 = arith.constant 8 : i32
    %50 = arith.muli %arg0, %c8_i32_24 : i32
    %c5_i32 = arith.constant 5 : i32
    %51 = arith.addi %50, %c5_i32 : i32
    %52 = arith.index_cast %51 : i32 to index
    %53 = memref.load %arg1[%52] : memref<8xi32, #tpu.memory_space<smem>>
    %c5_i32_25 = arith.constant 5 : i32
    %c5_i32_26 = arith.constant 5 : i32
    %c0_i32_27 = arith.constant 0 : i32
    %54 = tpu.memref_slice %arg2[%53, %c0_i32_27] : memref<16x32xf32, #tpu.memory_space<any>> -> memref<1x32xf32, #tpu.memory_space<any>>
    %55 = tpu.memref_squeeze %54 : memref<1x32xf32, #tpu.memory_space<any>> -> memref<32xf32, #tpu.memory_space<any>>
    %c0_i32_28 = arith.constant 0 : i32
    %56 = tpu.memref_slice %arg4[%c5_i32_25, %c0_i32_28] : memref<8x32xf32, #tpu.memory_space<vmem>> -> memref<1x32xf32, #tpu.memory_space<vmem>>
    %57 = tpu.memref_squeeze %56 : memref<1x32xf32, #tpu.memory_space<vmem>> -> memref<32xf32, #tpu.memory_space<vmem>>
    %58 = tpu.memref_slice %arg5[%c5_i32_26] : memref<8x!tpu.dma_semaphore, #tpu.memory_space<semaphore_mem>> -> memref<1x!tpu.dma_semaphore, #tpu.memory_space<semaphore_mem>>
    %59 = tpu.memref_squeeze %58 : memref<1x!tpu.dma_semaphore, #tpu.memory_space<semaphore_mem>> -> memref<!tpu.dma_semaphore, #tpu.memory_space<semaphore_mem>>
    tpu.enqueue_dma source(%55 : memref<32xf32, #tpu.memory_space<any>>) target(%57 : memref<32xf32, #tpu.memory_space<vmem>>) target_semaphore(%59 : memref<!tpu.dma_semaphore, #tpu.memory_space<semaphore_mem>>)
    %c8_i32_29 = arith.constant 8 : i32
    %60 = arith.muli %arg0, %c8_i32_29 : i32
    %c6_i32 = arith.constant 6 : i32
    %61 = arith.addi %60, %c6_i32 : i32
    %62 = arith.index_cast %61 : i32 to index
    %63 = memref.load %arg1[%62] : memref<8xi32, #tpu.memory_space<smem>>
    %c6_i32_30 = arith.constant 6 : i32
    %c6_i32_31 = arith.constant 6 : i32
    %c0_i32_32 = arith.constant 0 : i32
    %64 = tpu.memref_slice %arg2[%63, %c0_i32_32] : memref<16x32xf32, #tpu.memory_space<any>> -> memref<1x32xf32, #tpu.memory_space<any>>
    %65 = tpu.memref_squeeze %64 : memref<1x32xf32, #tpu.memory_space<any>> -> memref<32xf32, #tpu.memory_space<any>>
    %c0_i32_33 = arith.constant 0 : i32
    %66 = tpu.memref_slice %arg4[%c6_i32_30, %c0_i32_33] : memref<8x32xf32, #tpu.memory_space<vmem>> -> memref<1x32xf32, #tpu.memory_space<vmem>>
    %67 = tpu.memref_squeeze %66 : memref<1x32xf32, #tpu.memory_space<vmem>> -> memref<32xf32, #tpu.memory_space<vmem>>
    %68 = tpu.memref_slice %arg5[%c6_i32_31] : memref<8x!tpu.dma_semaphore, #tpu.memory_space<semaphore_mem>> -> memref<1x!tpu.dma_semaphore, #tpu.memory_space<semaphore_mem>>
    %69 = tpu.memref_squeeze %68 : memref<1x!tpu.dma_semaphore, #tpu.memory_space<semaphore_mem>> -> memref<!tpu.dma_semaphore, #tpu.memory_space<semaphore_mem>>
    tpu.enqueue_dma source(%65 : memref<32xf32, #tpu.memory_space<any>>) target(%67 : memref<32xf32, #tpu.memory_space<vmem>>) target_semaphore(%69 : memref<!tpu.dma_semaphore, #tpu.memory_space<semaphore_mem>>)
    %c8_i32_34 = arith.constant 8 : i32
    %70 = arith.muli %arg0, %c8_i32_34 : i32
    %c7_i32 = arith.constant 7 : i32
    %71 = arith.addi %70, %c7_i32 : i32
    %72 = arith.index_cast %71 : i32 to index
    %73 = memref.load %arg1[%72] : memref<8xi32, #tpu.memory_space<smem>>
    %c7_i32_35 = arith.constant 7 : i32
    %c7_i32_36 = arith.constant 7 : i32
    %c0_i32_37 = arith.constant 0 : i32
    %74 = tpu.memref_slice %arg2[%73, %c0_i32_37] : memref<16x32xf32, #tpu.memory_space<any>> -> memref<1x32xf32, #tpu.memory_space<any>>
    %75 = tpu.memref_squeeze %74 : memref<1x32xf32, #tpu.memory_space<any>> -> memref<32xf32, #tpu.memory_space<any>>
    %c0_i32_38 = arith.constant 0 : i32
    %76 = tpu.memref_slice %arg4[%c7_i32_35, %c0_i32_38] : memref<8x32xf32, #tpu.memory_space<vmem>> -> memref<1x32xf32, #tpu.memory_space<vmem>>
    %77 = tpu.memref_squeeze %76 : memref<1x32xf32, #tpu.memory_space<vmem>> -> memref<32xf32, #tpu.memory_space<vmem>>
    %78 = tpu.memref_slice %arg5[%c7_i32_36] : memref<8x!tpu.dma_semaphore, #tpu.memory_space<semaphore_mem>> -> memref<1x!tpu.dma_semaphore, #tpu.memory_space<semaphore_mem>>
    %79 = tpu.memref_squeeze %78 : memref<1x!tpu.dma_semaphore, #tpu.memory_space<semaphore_mem>> -> memref<!tpu.dma_semaphore, #tpu.memory_space<semaphore_mem>>
    tpu.enqueue_dma source(%75 : memref<32xf32, #tpu.memory_space<any>>) target(%77 : memref<32xf32, #tpu.memory_space<vmem>>) target_semaphore(%79 : memref<!tpu.dma_semaphore, #tpu.memory_space<semaphore_mem>>)
    %c0_i32_39 = arith.constant 0 : i32
    %c0_i32_40 = arith.constant 0 : i32
    %c0_i32_41 = arith.constant 0 : i32
    %c0_i32_42 = arith.constant 0 : i32
    %80 = tpu.memref_slice %arg2[%c0_i32_39, %c0_i32_42] : memref<16x32xf32, #tpu.memory_space<any>> -> memref<1x32xf32, #tpu.memory_space<any>>
    %81 = tpu.memref_squeeze %80 : memref<1x32xf32, #tpu.memory_space<any>> -> memref<32xf32, #tpu.memory_space<any>>
    %c0_i32_43 = arith.constant 0 : i32
    %82 = tpu.memref_slice %arg4[%c0_i32_40, %c0_i32_43] : memref<8x32xf32, #tpu.memory_space<vmem>> -> memref<1x32xf32, #tpu.memory_space<vmem>>
    %83 = tpu.memref_squeeze %82 : memref<1x32xf32, #tpu.memory_space<vmem>> -> memref<32xf32, #tpu.memory_space<vmem>>
    %84 = tpu.memref_slice %arg5[%c0_i32_41] : memref<8x!tpu.dma_semaphore, #tpu.memory_space<semaphore_mem>> -> memref<1x!tpu.dma_semaphore, #tpu.memory_space<semaphore_mem>>
    %85 = tpu.memref_squeeze %84 : memref<1x!tpu.dma_semaphore, #tpu.memory_space<semaphore_mem>> -> memref<!tpu.dma_semaphore, #tpu.memory_space<semaphore_mem>>
    tpu.wait_dma2 semaphore(%85 : memref<!tpu.dma_semaphore, #tpu.memory_space<semaphore_mem>>) src(%81 : memref<32xf32, #tpu.memory_space<any>>) dst(%83 : memref<32xf32, #tpu.memory_space<vmem>>)
    %c0_i32_44 = arith.constant 0 : i32
    %c1_i32_45 = arith.constant 1 : i32
    %c1_i32_46 = arith.constant 1 : i32
    %c0_i32_47 = arith.constant 0 : i32
    %86 = tpu.memref_slice %arg2[%c0_i32_44, %c0_i32_47] : memref<16x32xf32, #tpu.memory_space<any>> -> memref<1x32xf32, #tpu.memory_space<any>>
    %87 = tpu.memref_squeeze %86 : memref<1x32xf32, #tpu.memory_space<any>> -> memref<32xf32, #tpu.memory_space<any>>
    %c0_i32_48 = arith.constant 0 : i32
    %88 = tpu.memref_slice %arg4[%c1_i32_45, %c0_i32_48] : memref<8x32xf32, #tpu.memory_space<vmem>> -> memref<1x32xf32, #tpu.memory_space<vmem>>
    %89 = tpu.memref_squeeze %88 : memref<1x32xf32, #tpu.memory_space<vmem>> -> memref<32xf32, #tpu.memory_space<vmem>>
    %90 = tpu.memref_slice %arg5[%c1_i32_46] : memref<8x!tpu.dma_semaphore, #tpu.memory_space<semaphore_mem>> -> memref<1x!tpu.dma_semaphore, #tpu.memory_space<semaphore_mem>>
    %91 = tpu.memref_squeeze %90 : memref<1x!tpu.dma_semaphore, #tpu.memory_space<semaphore_mem>> -> memref<!tpu.dma_semaphore, #tpu.memory_space<semaphore_mem>>
    tpu.wait_dma2 semaphore(%91 : memref<!tpu.dma_semaphore, #tpu.memory_space<semaphore_mem>>) src(%87 : memref<32xf32, #tpu.memory_space<any>>) dst(%89 : memref<32xf32, #tpu.memory_space<vmem>>)
    %c0_i32_49 = arith.constant 0 : i32
    %c2_i32_50 = arith.constant 2 : i32
    %c2_i32_51 = arith.constant 2 : i32
    %c0_i32_52 = arith.constant 0 : i32
    %92 = tpu.memref_slice %arg2[%c0_i32_49, %c0_i32_52] : memref<16x32xf32, #tpu.memory_space<any>> -> memref<1x32xf32, #tpu.memory_space<any>>
    %93 = tpu.memref_squeeze %92 : memref<1x32xf32, #tpu.memory_space<any>> -> memref<32xf32, #tpu.memory_space<any>>
    %c0_i32_53 = arith.constant 0 : i32
    %94 = tpu.memref_slice %arg4[%c2_i32_50, %c0_i32_53] : memref<8x32xf32, #tpu.memory_space<vmem>> -> memref<1x32xf32, #tpu.memory_space<vmem>>
    %95 = tpu.memref_squeeze %94 : memref<1x32xf32, #tpu.memory_space<vmem>> -> memref<32xf32, #tpu.memory_space<vmem>>
    %96 = tpu.memref_slice %arg5[%c2_i32_51] : memref<8x!tpu.dma_semaphore, #tpu.memory_space<semaphore_mem>> -> memref<1x!tpu.dma_semaphore, #tpu.memory_space<semaphore_mem>>
    %97 = tpu.memref_squeeze %96 : memref<1x!tpu.dma_semaphore, #tpu.memory_space<semaphore_mem>> -> memref<!tpu.dma_semaphore, #tpu.memory_space<semaphore_mem>>
    tpu.wait_dma2 semaphore(%97 : memref<!tpu.dma_semaphore, #tpu.memory_space<semaphore_mem>>) src(%93 : memref<32xf32, #tpu.memory_space<any>>) dst(%95 : memref<32xf32, #tpu.memory_space<vmem>>)
    %c0_i32_54 = arith.constant 0 : i32
    %c3_i32_55 = arith.constant 3 : i32
    %c3_i32_56 = arith.constant 3 : i32
    %c0_i32_57 = arith.constant 0 : i32
    %98 = tpu.memref_slice %arg2[%c0_i32_54, %c0_i32_57] : memref<16x32xf32, #tpu.memory_space<any>> -> memref<1x32xf32, #tpu.memory_space<any>>
    %99 = tpu.memref_squeeze %98 : memref<1x32xf32, #tpu.memory_space<any>> -> memref<32xf32, #tpu.memory_space<any>>
    %c0_i32_58 = arith.constant 0 : i32
    %100 = tpu.memref_slice %arg4[%c3_i32_55, %c0_i32_58] : memref<8x32xf32, #tpu.memory_space<vmem>> -> memref<1x32xf32, #tpu.memory_space<vmem>>
    %101 = tpu.memref_squeeze %100 : memref<1x32xf32, #tpu.memory_space<vmem>> -> memref<32xf32, #tpu.memory_space<vmem>>
    %102 = tpu.memref_slice %arg5[%c3_i32_56] : memref<8x!tpu.dma_semaphore, #tpu.memory_space<semaphore_mem>> -> memref<1x!tpu.dma_semaphore, #tpu.memory_space<semaphore_mem>>
    %103 = tpu.memref_squeeze %102 : memref<1x!tpu.dma_semaphore, #tpu.memory_space<semaphore_mem>> -> memref<!tpu.dma_semaphore, #tpu.memory_space<semaphore_mem>>
    tpu.wait_dma2 semaphore(%103 : memref<!tpu.dma_semaphore, #tpu.memory_space<semaphore_mem>>) src(%99 : memref<32xf32, #tpu.memory_space<any>>) dst(%101 : memref<32xf32, #tpu.memory_space<vmem>>)
    %c0_i32_59 = arith.constant 0 : i32
    %c4_i32_60 = arith.constant 4 : i32
    %c4_i32_61 = arith.constant 4 : i32
    %c0_i32_62 = arith.constant 0 : i32
    %104 = tpu.memref_slice %arg2[%c0_i32_59, %c0_i32_62] : memref<16x32xf32, #tpu.memory_space<any>> -> memref<1x32xf32, #tpu.memory_space<any>>
    %105 = tpu.memref_squeeze %104 : memref<1x32xf32, #tpu.memory_space<any>> -> memref<32xf32, #tpu.memory_space<any>>
    %c0_i32_63 = arith.constant 0 : i32
    %106 = tpu.memref_slice %arg4[%c4_i32_60, %c0_i32_63] : memref<8x32xf32, #tpu.memory_space<vmem>> -> memref<1x32xf32, #tpu.memory_space<vmem>>
    %107 = tpu.memref_squeeze %106 : memref<1x32xf32, #tpu.memory_space<vmem>> -> memref<32xf32, #tpu.memory_space<vmem>>
    %108 = tpu.memref_slice %arg5[%c4_i32_61] : memref<8x!tpu.dma_semaphore, #tpu.memory_space<semaphore_mem>> -> memref<1x!tpu.dma_semaphore, #tpu.memory_space<semaphore_mem>>
    %109 = tpu.memref_squeeze %108 : memref<1x!tpu.dma_semaphore, #tpu.memory_space<semaphore_mem>> -> memref<!tpu.dma_semaphore, #tpu.memory_space<semaphore_mem>>
    tpu.wait_dma2 semaphore(%109 : memref<!tpu.dma_semaphore, #tpu.memory_space<semaphore_mem>>) src(%105 : memref<32xf32, #tpu.memory_space<any>>) dst(%107 : memref<32xf32, #tpu.memory_space<vmem>>)
    %c0_i32_64 = arith.constant 0 : i32
    %c5_i32_65 = arith.constant 5 : i32
    %c5_i32_66 = arith.constant 5 : i32
    %c0_i32_67 = arith.constant 0 : i32
    %110 = tpu.memref_slice %arg2[%c0_i32_64, %c0_i32_67] : memref<16x32xf32, #tpu.memory_space<any>> -> memref<1x32xf32, #tpu.memory_space<any>>
    %111 = tpu.memref_squeeze %110 : memref<1x32xf32, #tpu.memory_space<any>> -> memref<32xf32, #tpu.memory_space<any>>
    %c0_i32_68 = arith.constant 0 : i32
    %112 = tpu.memref_slice %arg4[%c5_i32_65, %c0_i32_68] : memref<8x32xf32, #tpu.memory_space<vmem>> -> memref<1x32xf32, #tpu.memory_space<vmem>>
    %113 = tpu.memref_squeeze %112 : memref<1x32xf32, #tpu.memory_space<vmem>> -> memref<32xf32, #tpu.memory_space<vmem>>
    %114 = tpu.memref_slice %arg5[%c5_i32_66] : memref<8x!tpu.dma_semaphore, #tpu.memory_space<semaphore_mem>> -> memref<1x!tpu.dma_semaphore, #tpu.memory_space<semaphore_mem>>
    %115 = tpu.memref_squeeze %114 : memref<1x!tpu.dma_semaphore, #tpu.memory_space<semaphore_mem>> -> memref<!tpu.dma_semaphore, #tpu.memory_space<semaphore_mem>>
    tpu.wait_dma2 semaphore(%115 : memref<!tpu.dma_semaphore, #tpu.memory_space<semaphore_mem>>) src(%111 : memref<32xf32, #tpu.memory_space<any>>) dst(%113 : memref<32xf32, #tpu.memory_space<vmem>>)
    %c0_i32_69 = arith.constant 0 : i32
    %c6_i32_70 = arith.constant 6 : i32
    %c6_i32_71 = arith.constant 6 : i32
    %c0_i32_72 = arith.constant 0 : i32
    %116 = tpu.memref_slice %arg2[%c0_i32_69, %c0_i32_72] : memref<16x32xf32, #tpu.memory_space<any>> -> memref<1x32xf32, #tpu.memory_space<any>>
    %117 = tpu.memref_squeeze %116 : memref<1x32xf32, #tpu.memory_space<any>> -> memref<32xf32, #tpu.memory_space<any>>
    %c0_i32_73 = arith.constant 0 : i32
    %118 = tpu.memref_slice %arg4[%c6_i32_70, %c0_i32_73] : memref<8x32xf32, #tpu.memory_space<vmem>> -> memref<1x32xf32, #tpu.memory_space<vmem>>
    %119 = tpu.memref_squeeze %118 : memref<1x32xf32, #tpu.memory_space<vmem>> -> memref<32xf32, #tpu.memory_space<vmem>>
    %120 = tpu.memref_slice %arg5[%c6_i32_71] : memref<8x!tpu.dma_semaphore, #tpu.memory_space<semaphore_mem>> -> memref<1x!tpu.dma_semaphore, #tpu.memory_space<semaphore_mem>>
    %121 = tpu.memref_squeeze %120 : memref<1x!tpu.dma_semaphore, #tpu.memory_space<semaphore_mem>> -> memref<!tpu.dma_semaphore, #tpu.memory_space<semaphore_mem>>
    tpu.wait_dma2 semaphore(%121 : memref<!tpu.dma_semaphore, #tpu.memory_space<semaphore_mem>>) src(%117 : memref<32xf32, #tpu.memory_space<any>>) dst(%119 : memref<32xf32, #tpu.memory_space<vmem>>)
    %c0_i32_74 = arith.constant 0 : i32
    %c7_i32_75 = arith.constant 7 : i32
    %c7_i32_76 = arith.constant 7 : i32
    %c0_i32_77 = arith.constant 0 : i32
    %122 = tpu.memref_slice %arg2[%c0_i32_74, %c0_i32_77] : memref<16x32xf32, #tpu.memory_space<any>> -> memref<1x32xf32, #tpu.memory_space<any>>
    %123 = tpu.memref_squeeze %122 : memref<1x32xf32, #tpu.memory_space<any>> -> memref<32xf32, #tpu.memory_space<any>>
    %c0_i32_78 = arith.constant 0 : i32
    %124 = tpu.memref_slice %arg4[%c7_i32_75, %c0_i32_78] : memref<8x32xf32, #tpu.memory_space<vmem>> -> memref<1x32xf32, #tpu.memory_space<vmem>>
    %125 = tpu.memref_squeeze %124 : memref<1x32xf32, #tpu.memory_space<vmem>> -> memref<32xf32, #tpu.memory_space<vmem>>
    %126 = tpu.memref_slice %arg5[%c7_i32_76] : memref<8x!tpu.dma_semaphore, #tpu.memory_space<semaphore_mem>> -> memref<1x!tpu.dma_semaphore, #tpu.memory_space<semaphore_mem>>
    %127 = tpu.memref_squeeze %126 : memref<1x!tpu.dma_semaphore, #tpu.memory_space<semaphore_mem>> -> memref<!tpu.dma_semaphore, #tpu.memory_space<semaphore_mem>>
    tpu.wait_dma2 semaphore(%127 : memref<!tpu.dma_semaphore, #tpu.memory_space<semaphore_mem>>) src(%123 : memref<32xf32, #tpu.memory_space<any>>) dst(%125 : memref<32xf32, #tpu.memory_space<vmem>>)
    %c0 = arith.constant 0 : index
    %c0_79 = arith.constant 0 : index
    %128 = vector.load %arg4[%c0, %c0_79] : memref<8x32xf32, #tpu.memory_space<vmem>>, vector<8x32xf32>
    %c0_80 = arith.constant 0 : index
    %c0_81 = arith.constant 0 : index
    %129 = vector.load %arg3[%c0_80, %c0_81] : memref<8x32xf32, #tpu.memory_space<vmem>>, vector<8x32xf32>
    tpu.vector_store %arg3[%c0_80, %c0_81], %128 {strides = array<i32>} : memref<8x32xf32, #tpu.memory_space<vmem>>, vector<8x32xf32>,
    return
  }
  func.func @transform_1(%arg0: i32, %arg1: memref<8xi32, #tpu.memory_space<smem>>) -> (i32, i32) {
    %c0_i32 = arith.constant 0 : i32
    %c0_i32_0 = arith.constant 0 : i32
    return %arg0, %c0_i32 : i32, i32
  }
}

</mosaic_0001>

<bundles_post_ra>
// kernel: tpu_custom_call.1
= control target key start
LH: loop header
LB: loop body
LE: loop exit
PB: predicated region body
PF: predicated region fallthrough
CT: control target
= control target key end

     0   :  { %s704_s0 = inlined_call_operand.hbm [shape: s32[8], index: 0, kind: input, shape index: {}]   ;;  %s705_s1 = inlined_call_operand.hbm [shape: f32[16,32], index: 1, kind: input, shape index: {}]   ;;  %s706_s2 = inlined_call_operand.hbm [shape: f32[8,32], index: 2, kind: output, shape index: {}]  }
   0x1   :  { %s283_s11 = scalar_lea.hbm %s704_s0, 16 }
   0x2   :  { %p284_p0 = scmp.ne.s32.totalorder %s704_s0, %s283_s11  ;;  %p287_p1 = scmp.lt.u32.totalorder %s283_s11, %s704_s0 }
   0x4   :  { %p289_p2 = pnand %p287_p1, %p284_p0 }
   0x6   :  { %292 = shalt.err (!%p289_p2)  }
   0x7   :  { %s527_s16 = smov [#allocation5]  }
   0x8   :  { %8 = dma.hbm_to_smem %s704_s0, 16, %s527_s16, [#allocation4] }
   0x9   :  { %507 = dma.done.wait [#allocation4], 16 }
   0xa   :  { %508 = vsyncadd [#allocation4], 4294967280 }
   0xb   :  { %10 = sfence }
   0xc   :  { %11 = vsyncpa [#allocation7], 0  ;;  %s13_s19 = sld [smem:[#allocation5]]  ;;  %s528_s20 = smov [#allocation2]  }
   0xd   :  { %s23_s21 = sshll.u32 %s528_s20, 4  ;;  %s564_s22 = sld [smem:[#allocation5 + $0x1]]  ;;  %s566_s21 = int_to_ptr.vmem [resolvable:$true] %s23_s21 }
   0xe   :  { %s529_s23 = smov [#allocation2 + $0x1]   ;;  %s568_s25 = sld [smem:[#allocation5 + $0x2]] }
   0xf   :  { %s40_s24 = sshll.u32 %s529_s23, 4  ;;  %s530_s26 = smov [#allocation2 + $0x2]   ;;  %s570_s24 = int_to_ptr.vmem [resolvable:$true] %s40_s24 }
  0x10   :  { %s57_s0 = sshll.u32 %s530_s26, 4  ;;  %s572_s27 = sld [smem:[#allocation5 + $0x3]]  ;;  %s574_s0 = int_to_ptr.vmem [resolvable:$true] %s57_s0 }
  0x11   :  { %s583_s8 = scalar_lea.hbm %s705_s1, 256 }
  0x12   :  { %s250_s28 = sshll.u32 %s13_s19, 4 }
  0x13   :  { %s15_s3 = scalar_lea.hbm %s705_s1, %s250_s28  ;;  %s252_s4 = sshll.u32 %s564_s22, 4 }
  0x14   :  { %s293_s5 = scalar_lea.hbm %s15_s3, 16  ;;  %p296_p4 = scmp.lt.u32.totalorder %s15_s3, %s705_s1 }
  0x15   :  { %p294_p3 = scmp.ne.s32.totalorder %s15_s3, %s293_s5  ;;  %p297_p5 = scmp.lt.u32.totalorder %s583_s8, %s293_s5 }
  0x16   :  { %p299_p7 = scmp.lt.u32.totalorder %s293_s5, %s15_s3 }
  0x17   :  { %p298_p6 = por %p297_p5, %p296_p4 }
  0x19   :  { %p300_p8 = por %p299_p7, %p298_p6 }
  0x1b   :  { %p301_p9 = pnand %p300_p8, %p294_p3 }
  0x1d   :  { %304 = shalt.err (!%p301_p9)  }
  0x1e   :  { %s305_s11 = scalar_lea.vmem %s566_s21, 16  ;;  %s592_s12 = scalar_lea.vmem %s566_s21, 128 }
  0x1f   :  { %p306_p10 = scmp.ne.s32.totalorder %s566_s21, %s305_s11  ;;  %p310_p11 = scmp.lt.s32.totalorder %s566_s21, %s566_s21 }
  0x20   :  { %p311_p12 = scmp.lt.s32.totalorder %s592_s12, %s305_s11 }
  0x22   :  { %p312_p13 = por %p311_p12, %p310_p11 }
  0x24   :  { %p313_p0 = pnand %p312_p13, %p306_p10 }
  0x26   :  { %316 = shalt.err (!%p313_p0)  }
  0x27   :  { %26 = dma.hbm_to_vmem [thread:$0]  %s15_s3, 16, %s566_s21, [#allocation3] }
  0x28   :  { %s30_s15 = scalar_lea.hbm %s705_s1, %s252_s4  ;;  %s254_s16 = sshll.u32 %s568_s25, 4 }
  0x29   :  { %s317_s17 = scalar_lea.hbm %s30_s15, 16  ;;  %p320_p2 = scmp.lt.u32.totalorder %s30_s15, %s705_s1 }
  0x2a   :  { %p318_p1 = scmp.ne.s32.totalorder %s30_s15, %s317_s17  ;;  %p321_p3 = scmp.lt.u32.totalorder %s583_s8, %s317_s17 }
  0x2b   :  { %p323_p5 = scmp.lt.u32.totalorder %s317_s17, %s30_s15 }
  0x2c   :  { %p322_p4 = por %p321_p3, %p320_p2 }
  0x2e   :  { %p324_p6 = por %p323_p5, %p322_p4 }
  0x30   :  { %p325_p7 = pnand %p324_p6, %p318_p1 }
  0x32   :  { %328 = shalt.err (!%p325_p7)  }
  0x33   :  { %s329_s20 = scalar_lea.vmem %s570_s24, 16  ;;  %p334_p9 = scmp.lt.s32.totalorder %s570_s24, %s566_s21 }
  0x34   :  { %p330_p8 = scmp.ne.s32.totalorder %s570_s24, %s329_s20  ;;  %p335_p10 = scmp.lt.s32.totalorder %s592_s12, %s329_s20 }
  0x36   :  { %p336_p11 = por %p335_p10, %p334_p9 }
  0x38   :  { %p337_p12 = pnand %p336_p11, %p330_p8 }
  0x3a   :  { %340 = shalt.err (!%p337_p12)  }
  0x3b   :  { %43 = dma.hbm_to_vmem [thread:$0]  %s30_s15, 16, %s570_s24, [#allocation3 + $0x1] }
  0x3c   :  { %s47_s25 = scalar_lea.hbm %s705_s1, %s254_s16  ;;  %s256_s26 = sshll.u32 %s572_s27, 4 }
  0x3d   :  { %s341_s28 = scalar_lea.hbm %s47_s25, 16  ;;  %p344_p0 = scmp.lt.u32.totalorder %s47_s25, %s705_s1 }
  0x3e   :  { %p342_p13 = scmp.ne.s32.totalorder %s47_s25, %s341_s28  ;;  %p345_p1 = scmp.lt.u32.totalorder %s583_s8, %s341_s28 }
  0x3f   :  { %p347_p3 = scmp.lt.u32.totalorder %s341_s28, %s47_s25 }
  0x40   :  { %p346_p2 = por %p345_p1, %p344_p0 }
  0x42   :  { %p348_p4 = por %p347_p3, %p346_p2 }
  0x44   :  { %p349_p5 = pnand %p348_p4, %p342_p13 }
  0x46   :  { %352 = shalt.err (!%p349_p5)  }
  0x47   :  { %s353_s24 = scalar_lea.vmem %s574_s0, 16  ;;  %p358_p7 = scmp.lt.s32.totalorder %s574_s0, %s566_s21 }
  0x48   :  { %p354_p6 = scmp.ne.s32.totalorder %s574_s0, %s353_s24  ;;  %p359_p8 = scmp.lt.s32.totalorder %s592_s12, %s353_s24 }
  0x4a   :  { %p360_p9 = por %p359_p8, %p358_p7 }
  0x4c   :  { %p361_p10 = pnand %p360_p9, %p354_p6 }
  0x4e   :  { %364 = shalt.err (!%p361_p10)  }
  0x4f   :  { %60 = dma.hbm_to_vmem [thread:$0]  %s47_s25, 16, %s574_s0, [#allocation3 + $0x2] }
  0x50   :  { %s64_s4 = scalar_lea.hbm %s705_s1, %s256_s26  ;;  %s531_s5 = smov [#allocation2 + $0x3]  }
  0x51   :  { %s74_s6 = sshll.u32 %s531_s5, 4  ;;  %s629_s7 = sld [smem:[#allocation5 + $0x4]]  ;;  %s75_s6 = int_to_ptr.vmem [resolvable:$true] %s74_s6 }
  0x52   :  { %s365_s9 = scalar_lea.hbm %s64_s4, 16  ;;  %p368_p12 = scmp.lt.u32.totalorder %s64_s4, %s705_s1 }
  0x53   :  { %p366_p11 = scmp.ne.s32.totalorder %s64_s4, %s365_s9  ;;  %p369_p13 = scmp.lt.u32.totalorder %s583_s8, %s365_s9 }
  0x54   :  { %p371_p1 = scmp.lt.u32.totalorder %s365_s9, %s64_s4 }
  0x55   :  { %p370_p0 = por %p369_p13, %p368_p12 }
  0x57   :  { %p372_p2 = por %p371_p1, %p370_p0 }
  0x59   :  { %p373_p3 = pnand %p372_p2, %p366_p11 }
  0x5b   :  { %376 = shalt.err (!%p373_p3)  }
  0x5c   :  { %s377_s0 = scalar_lea.vmem %s75_s6, 16  ;;  %p382_p5 = scmp.lt.s32.totalorder %s75_s6, %s566_s21 }
  0x5d   :  { %p378_p4 = scmp.ne.s32.totalorder %s75_s6, %s377_s0  ;;  %p383_p6 = scmp.lt.s32.totalorder %s592_s12, %s377_s0 }
  0x5f   :  { %p384_p7 = por %p383_p6, %p382_p5 }
  0x61   :  { %p385_p8 = pnand %p384_p7, %p378_p4 }
  0x63   :  { %388 = shalt.err (!%p385_p8)  }
  0x64   :  { %77 = dma.hbm_to_vmem [thread:$0]  %s64_s4, 16, %s75_s6, [#allocation3 + $0x3] }
  0x65   :  { %s532_s13 = smov [#allocation2 + $0x4]   ;;  %s637_s15 = sld [smem:[#allocation5 + $0x5]] }
  0x66   :  { %s91_s14 = sshll.u32 %s532_s13, 4  ;;  %s533_s16 = smov [#allocation2 + $0x5]   ;;  %s92_s14 = int_to_ptr.vmem [resolvable:$true] %s91_s14 }
  0x67   :  { %s108_s17 = sshll.u32 %s533_s16, 4  ;;  %s639_s18 = sld [smem:[#allocation5 + $0x6]]  ;;  %s642_s17 = int_to_ptr.vmem [resolvable:$true] %s108_s17 }
  0x68   :  { %s258_s19 = sshll.u32 %s629_s7, 4 }
  0x69   :  { %s81_s23 = scalar_lea.hbm %s705_s1, %s258_s19 }
  0x6a   :  { %s389_s25 = scalar_lea.hbm %s81_s23, 16  ;;  %p392_p10 = scmp.lt.u32.totalorder %s81_s23, %s705_s1 }
  0x6b   :  { %p390_p9 = scmp.ne.s32.totalorder %s81_s23, %s389_s25  ;;  %p393_p11 = scmp.lt.u32.totalorder %s583_s8, %s389_s25 }
  0x6c   :  { %p395_p13 = scmp.lt.u32.totalorder %s389_s25, %s81_s23 }
  0x6d   :  { %p394_p12 = por %p393_p11, %p392_p10 }
  0x6f   :  { %p396_p0 = por %p395_p13, %p394_p12 }
  0x71   :  { %p397_p1 = pnand %p396_p0, %p390_p9 }
  0x73   :  { %400 = shalt.err (!%p397_p1)  }
  0x74   :  { %s401_s29 = scalar_lea.vmem %s92_s14, 16  ;;  %p406_p3 = scmp.lt.s32.totalorder %s92_s14, %s566_s21 }
  0x75   :  { %p402_p2 = scmp.ne.s32.totalorder %s92_s14, %s401_s29  ;;  %p407_p4 = scmp.lt.s32.totalorder %s592_s12, %s401_s29 }
  0x77   :  { %p408_p5 = por %p407_p4, %p406_p3 }
  0x79   :  { %p409_p6 = pnand %p408_p5, %p402_p2 }
  0x7b   :  { %412 = shalt.err (!%p409_p6)  }
  0x7c   :  { %94 = dma.hbm_to_vmem [thread:$0]  %s81_s23, 16, %s92_s14, [#allocation3 + $0x4] }
  0x7d   :  { %s260_s30 = sshll.u32 %s637_s15, 4  ;;  %s534_s24 = smov [#allocation2 + $0x6]  }
  0x7e   :  { %s125_s27 = sshll.u32 %s534_s24, 4  ;;  %s98_s5 = scalar_lea.hbm %s705_s1, %s260_s30  ;;  %s657_s27 = int_to_ptr.vmem [resolvable:$true] %s125_s27 }
  0x7f   :  { %s413_s6 = scalar_lea.hbm %s98_s5, 16  ;;  %p416_p8 = scmp.lt.u32.totalorder %s98_s5, %s705_s1 }
  0x80   :  { %p414_p7 = scmp.ne.s32.totalorder %s98_s5, %s413_s6  ;;  %p417_p9 = scmp.lt.u32.totalorder %s583_s8, %s413_s6 }
  0x81   :  { %p419_p11 = scmp.lt.u32.totalorder %s413_s6, %s98_s5 }
  0x82   :  { %p418_p10 = por %p417_p9, %p416_p8 }
  0x84   :  { %p420_p12 = por %p419_p11, %p418_p10 }
  0x86   :  { %p421_p13 = pnand %p420_p12, %p414_p7 }
  0x88   :  { %424 = shalt.err (!%p421_p13)  }
  0x89   :  { %s425_s10 = scalar_lea.vmem %s642_s17, 16  ;;  %p430_p1 = scmp.lt.s32.totalorder %s642_s17, %s566_s21 }
  0x8a   :  { %p426_p0 = scmp.ne.s32.totalorder %s642_s17, %s425_s10  ;;  %p431_p2 = scmp.lt.s32.totalorder %s592_s12, %s425_s10 }
  0x8c   :  { %p432_p3 = por %p431_p2, %p430_p1 }
  0x8e   :  { %p433_p4 = pnand %p432_p3, %p426_p0 }
  0x90   :  { %436 = shalt.err (!%p433_p4)  }
  0x91   :  { %111 = dma.hbm_to_vmem [thread:$0]  %s98_s5, 16, %s642_s17, [#allocation3 + $0x5] }
  0x92   :  { %s262_s11 = sshll.u32 %s639_s18, 4  ;;  %s263_s0 = sld [smem:[#allocation5 + $0x7]] }
  0x93   :  { %s115_s15 = scalar_lea.hbm %s705_s1, %s262_s11 }
  0x94   :  { %s437_s16 = scalar_lea.hbm %s115_s15, 16  ;;  %p440_p6 = scmp.lt.u32.totalorder %s115_s15, %s705_s1 }
  0x95   :  { %p438_p5 = scmp.ne.s32.totalorder %s115_s15, %s437_s16  ;;  %p441_p7 = scmp.lt.u32.totalorder %s583_s8, %s437_s16 }
  0x96   :  { %p443_p9 = scmp.lt.u32.totalorder %s437_s16, %s115_s15 }
  0x97   :  { %p442_p8 = por %p441_p7, %p440_p6 }
  0x99   :  { %p444_p10 = por %p443_p9, %p442_p8 }
  0x9b   :  { %p445_p11 = pnand %p444_p10, %p438_p5 }
  0x9d   :  { %448 = shalt.err (!%p445_p11)  }
  0x9e   :  { %s449_s17 = scalar_lea.vmem %s657_s27, 16  ;;  %p454_p13 = scmp.lt.s32.totalorder %s657_s27, %s566_s21 }
  0x9f   :  { %p450_p12 = scmp.ne.s32.totalorder %s657_s27, %s449_s17  ;;  %p455_p0 = scmp.lt.s32.totalorder %s592_s12, %s449_s17 }
  0xa1   :  { %p456_p1 = por %p455_p0, %p454_p13 }
  0xa3   :  { %p457_p2 = pnand %p456_p1, %p450_p12 }
  0xa5   :  { %460 = shalt.err (!%p457_p2)  }
  0xa6   :  { %128 = dma.hbm_to_vmem [thread:$0]  %s115_s15, 16, %s657_s27, [#allocation3 + $0x6] }
  0xa7   :  { %s535_s18 = smov [#allocation2 + $0x7]   ;;  %s264_s23 = sshll.u32 %s263_s0, 4 }
  0xa8   :  { %s142_s22 = sshll.u32 %s535_s18, 4  ;;  %s132_s28 = scalar_lea.hbm %s705_s1, %s264_s23  ;;  %s143_s22 = int_to_ptr.vmem [resolvable:$true] %s142_s22 }
  0xa9   :  { %s461_s29 = scalar_lea.hbm %s132_s28, 16  ;;  %p464_p4 = scmp.lt.u32.totalorder %s132_s28, %s705_s1 }
  0xaa   :  { %p462_p3 = scmp.ne.s32.totalorder %s132_s28, %s461_s29  ;;  %p465_p5 = scmp.lt.u32.totalorder %s583_s8, %s461_s29 }
  0xab   :  { %p467_p7 = scmp.lt.u32.totalorder %s461_s29, %s132_s28 }
  0xac   :  { %p466_p6 = por %p465_p5, %p464_p4 }
  0xae   :  { %p468_p8 = por %p467_p7, %p466_p6 }
  0xb0   :  { %p469_p9 = pnand %p468_p8, %p462_p3 }
  0xb2   :  { %472 = shalt.err (!%p469_p9)  }
  0xb3   :  { %s473_s27 = scalar_lea.vmem %s143_s22, 16  ;;  %p478_p11 = scmp.lt.s32.totalorder %s143_s22, %s566_s21 }
  0xb4   :  { %p474_p10 = scmp.ne.s32.totalorder %s143_s22, %s473_s27  ;;  %p479_p12 = scmp.lt.s32.totalorder %s592_s12, %s473_s27 }
  0xb6   :  { %p480_p13 = por %p479_p12, %p478_p11 }
  0xb8   :  { %p481_p0 = pnand %p480_p13, %p474_p10 }
  0xba   :  { %484 = shalt.err (!%p481_p0)  }
  0xbb   :  { %145 = dma.hbm_to_vmem [thread:$0]  %s132_s28, 16, %s143_s22, [#allocation3 + $0x7] }
  0xbc   :  { %509 = dma.done.wait [#allocation3], 16 }
  0xbd   :  { %510 = vsyncadd [#allocation3], 4294967280 }
  0xbe   :  { %511 = dma.done.wait [#allocation3 + $0x1], 16 }
  0xbf   :  { %512 = vsyncadd [#allocation3 + $0x1], 4294967280 }
  0xc0   :  { %513 = dma.done.wait [#allocation3 + $0x2], 16 }
  0xc1   :  { %514 = vsyncadd [#allocation3 + $0x2], 4294967280 }
  0xc2   :  { %515 = dma.done.wait [#allocation3 + $0x3], 16 }
  0xc3   :  { %516 = vsyncadd [#allocation3 + $0x3], 4294967280 }
  0xc4   :  { %517 = dma.done.wait [#allocation3 + $0x4], 16 }
  0xc5   :  { %518 = vsyncadd [#allocation3 + $0x4], 4294967280 }
  0xc6   :  { %519 = dma.done.wait [#allocation3 + $0x5], 16 }
  0xc7   :  { %520 = vsyncadd [#allocation3 + $0x5], 4294967280 }
  0xc8   :  { %521 = dma.done.wait [#allocation3 + $0x6], 16 }
  0xc9   :  { %522 = vsyncadd [#allocation3 + $0x6], 4294967280 }
  0xca   :  { %523 = dma.done.wait [#allocation3 + $0x7], 16 }
  0xcb   :  { %524 = vsyncadd [#allocation3 + $0x7], 4294967280  ;;  %s536_s1 = smov [#allocation6]   ;;  %vm163_vm0 = vcmask 261120   ;;  %v162_v0 = vld [vmem:[#allocation2] sm:$0xff] }
  0xcc   :  { %s171_s21 = sshll.u32 %s536_s1, 4  ;;  %164 = vst.msk [vmem:[#allocation6] sm:$0xff] %vm163_vm0, %v162_v0  ;;  %s172_s21 = int_to_ptr.vmem [resolvable:$true] %s171_s21 }
  0xcd   :  { %s485_s8 = scalar_lea.vmem %s172_s21, 128  ;;  %p490_p2 = scmp.lt.s32.totalorder %s172_s21, %s172_s21 }
  0xce   :  { %p486_p1 = scmp.ne.s32.totalorder %s172_s21, %s485_s8  ;;  %p491_p3 = scmp.lt.s32.totalorder %s485_s8, %s485_s8 }
  0xd0   :  { %p492_p4 = por %p491_p3, %p490_p2 }
  0xd2   :  { %p493_p5 = pnand %p492_p4, %p486_p1 }
  0xd4   :  { %496 = shalt.err (!%p493_p5)
}
  0xd5   :  { %s497_s4 = scalar_lea.hbm %s706_s2, 128 }
  0xd6   :  { %p498_p6 = scmp.ne.s32.totalorder %s706_s2, %s497_s4  ;;  %p501_p7 = scmp.lt.u32.totalorder %s497_s4, %s706_s2 }
  0xd8   :  { %p503_p8 = pnand %p501_p7, %p498_p6 }
  0xda   :  { %506 = shalt.err (!%p503_p8)
}
  0xdb   :  { %174 = dma.vmem_to_hbm [thread:$0]  %s172_s21, 128, %s706_s2, [#allocation7]  }
  0xdc   :  { %525 = dma.done.wait [#allocation7], 128  }
  0xdd   :  { %526 = vsyncadd [#allocation7], 4294967168 }
  0xde   :  { %178 = vsyncpa [#allocation7], 1 }
  0xdf   :  { %179 = vsyncmov [#allocation3] }
  0xe2   :  { %s180_s0 = vpop.sfrf %179 }
  0xe3   :  { %p265_p9 = scmp.ne.s32.totalorder %s180_s0, 0 }
  0xe5   :  { %184 = shalt.err (%p265_p9)  }
  0xe6   :  { %186 = vsyncmov [#allocation3 + $0x1] }
  0xe9   :  { %s187_s13 = vpop.sfrf %186 }
  0xea   :  { %p266_p10 = scmp.ne.s32.totalorder %s187_s13, 0 }
  0xec   :  { %191 = shalt.err (%p266_p10)  }
  0xed   :  { %193 = vsyncmov [#allocation3 + $0x2] }
  0xf0   :  { %s194_s14 = vpop.sfrf %193 }
  0xf1   :  { %p267_p11 = scmp.ne.s32.totalorder %s194_s14, 0 }
  0xf3   :  { %198 = shalt.err (%p267_p11)  }
  0xf4   :  { %200 = vsyncmov [#allocation3 + $0x3] }
  0xf7   :  { %s201_s15 = vpop.sfrf %200 }
  0xf8   :  { %p268_p12 = scmp.ne.s32.totalorder %s201_s15, 0 }
  0xfa   :  { %205 = shalt.err (%p268_p12)  }
  0xfb   :  { %207 = vsyncmov [#allocation3 + $0x4] }
  0xfe   :  { %s208_s2 = vpop.sfrf %207 }
  0xff   :  { %p269_p13 = scmp.ne.s32.totalorder %s208_s2, 0 }
 0x101   :  { %212 = shalt.err (%p269_p13)  }
 0x102   :  { %214 = vsyncmov [#allocation3 + $0x5] }
 0x105   :  { %s215_s16 = vpop.sfrf %214 }
 0x106   :  { %p270_p0 = scmp.ne.s32.totalorder %s215_s16, 0 }
 0x108   :  { %219 = shalt.err (%p270_p0)  }
 0x109   :  { %221 = vsyncmov [#allocation3 + $0x6] }
 0x10c   :  { %s222_s19 = vpop.sfrf %221 }
 0x10d   :  { %p271_p1 = scmp.ne.s32.totalorder %s222_s19, 0 }
 0x10f   :  { %226 = shalt.err (%p271_p1)  }
 0x110   :  { %228 = vsyncmov [#allocation3 + $0x7] }
 0x113   :  { %s229_s20 = vpop.sfrf %228 }
 0x114   :  { %p272_p2 = scmp.ne.s32.totalorder %s229_s20, 0 }
 0x116   :  { %233 = shalt.err (%p272_p2)  }

</bundles_post_ra>
